<compile_context>
chip_gen: v7x
topology: tpu7x:2x2x1
jax: 0.10.0
libtpu: 0.0.40
codegen_flags: <defaults>
</compile_context>

<pallas_src>
import functools

import jax
import jax.numpy as jnp
from jax.experimental import pallas as pl
from jax.experimental.pallas import tpu as pltpu


def _round_up(x, m):
    return (x + m - 1) // m * m


def _qtran_vnet_kernel(s_ref, h_ref,
                       ws1_ref, bs1_ref, wh1_ref, bh1_ref,
                       ws23_ref, wh23_ref, b23_ref, wv2_ref, bv2_ref,
                       out_ref):
    """Batch-on-sublane layout: s_ref (tb, S), h_ref (tb, H*A), out_ref (tb, 1)."""
    f32 = jnp.float32

    # First Linear of each encoder + ReLU (two dots; no block-diagonal zero work).
    a1s = jnp.dot(s_ref[...], ws1_ref[...], preferred_element_type=f32) + bs1_ref[...]
    a1s = jnp.maximum(a1s, 0.0)
    a1h = jnp.dot(h_ref[...], wh1_ref[...], preferred_element_type=f32) + bh1_ref[...]
    a1h = jnp.maximum(a1h, 0.0)

    # Encoder second layer folded into v-encoder first layer:
    #   relu( concat(s_hid, h_hid) @ wv1 + bv1 )
    # = relu( a1s @ (ws2 @ wv1_top) + a1h @ (wh2 @ wv1_bot) + b23 )
    v1 = (jnp.dot(a1s, ws23_ref[...], preferred_element_type=f32)
          + jnp.dot(a1h, wh23_ref[...], preferred_element_type=f32)
          + b23_ref[...])
    v1 = jnp.maximum(v1, 0.0)

    # Final Linear(H -> 1): elementwise multiply + lane reduction (VPU/XLU),
    # not a 1-wide MXU matmul.
    v = jnp.sum(v1 * wv2_ref[...], axis=1, keepdims=True) + bv2_ref[...]
    out_ref[...] = v.astype(out_ref.dtype)


def _build_fused_params(params, *, hidden_shape, in_dtype):
    """Fold the (linear) encoder second layers into the v-encoder first layer and
    cast the first-layer weights to the activation dtype."""
    H = hidden_shape
    half = H // 2
    wv1_top = params["wv1"][:half, :]                 # (H/2, H)
    wv1_bot = params["wv1"][half:, :]                 # (H/2, H)

    ws23 = params["ws2"] @ wv1_top                    # (H, H)
    wh23 = params["wh2"] @ wv1_bot                    # (H, H)
    b23 = params["bs2"] @ wv1_top + params["bh2"] @ wv1_bot + params["bv1"]   # (1, H)

    return (
        params["ws1"].astype(in_dtype),               # (S, H)
        params["bs1"],                                # (1, H)
        params["wh1"].astype(in_dtype),               # (H*A, H)
        params["bh1"],                                # (1, H)
        ws23.astype(jnp.float32),                     # (H, H)
        wh23.astype(jnp.float32),                     # (H, H)
        b23.astype(jnp.float32),                      # (1, H)
        params["wv2"].T.astype(jnp.float32),          # (1, H) broadcast row
        params["bv2"].astype(jnp.float32),            # (1, 1)
    )


def qtran_vnet_forward(state, hidden, params, *, state_shape, hidden_shape,
                       n_agents, block_batch=4096, in_dtype=None):
    """state: (n_episode, T, ..., state_shape); hidden: (n_episode, T, n_agents, hidden_shape)."""
    n_episode = state.shape[0]
    S, H, A = state_shape, hidden_shape, n_agents

    # Reshape only (no HBM copies).  Optional explicit cast (see module docstring).
    s2d = state.reshape(-1, S)
    h2d = hidden.reshape(-1, H * A)
    if in_dtype is not None:
        s2d = s2d.astype(in_dtype)
        h2d = h2d.astype(in_dtype)
    x_dtype = s2d.dtype
    B = s2d.shape[0]

    # Batch tile: big enough to amortize the ~0.35us per-grid-step overhead, but
    # capped so the grid has >=2 steps whenever possible (v7x megacore split of
    # the "parallel" batch axis).  Sublane dim only needs divisibility by 8;
    # ragged last tiles are handled by Pallas partial-block masking.
    tb = min(_round_up(block_batch, 128), _round_up(pl.cdiv(B, 2), 8))
    tb = max(tb, 8)
    grid = (pl.cdiv(B, tb),)

    weights = _build_fused_params(params, hidden_shape=H, in_dtype=x_dtype)

    def _const_spec(arr):
        # Full-array block, constant index map -> DMA'd once, VMEM-resident.
        return pl.BlockSpec(arr.shape, lambda i: (0, 0))

    out = pl.pallas_call(
        _qtran_vnet_kernel,
        out_shape=jax.ShapeDtypeStruct((B, 1), jnp.float32),
        grid=grid,
        in_specs=[pl.BlockSpec((tb, S), lambda i: (i, 0)),
                  pl.BlockSpec((tb, H * A), lambda i: (i, 0))]
                 + [_const_spec(w) for w in weights],
        out_specs=pl.BlockSpec((tb, 1), lambda i: (i, 0)),
        compiler_params=pltpu.CompilerParams(
            dimension_semantics=("parallel",)),
    )(s2d, h2d, *weights)

    return out.reshape(n_episode, -1)


def init_params(key, state_shape, hidden_shape, n_agents):
    """Deterministic synthetic parameters, stored as (in_features, out_features)."""
    half = hidden_shape // 2
    shapes = {
        "ws1": (state_shape, hidden_shape), "bs1": (1, hidden_shape),
        "ws2": (hidden_shape, half),        "bs2": (1, half),
        "wh1": (hidden_shape * n_agents, hidden_shape), "bh1": (1, hidden_shape),
        "wh2": (hidden_shape, half),        "bh2": (1, half),
        "wv1": (hidden_shape, hidden_shape), "bv1": (1, hidden_shape),
        "wv2": (hidden_shape, 1),           "bv2": (1, 1),
    }
    params = {}
    keys = jax.random.split(key, len(shapes))
    for k, (name, shp) in zip(keys, sorted(shapes.items())):
        fan_in = shp[0] if name.startswith("w") else shapes["w" + name[1:]][0]
        scale = 1.0 / jnp.sqrt(jnp.float32(fan_in))
        params[name] = jax.random.uniform(
            k, shp, dtype=jnp.float32, minval=-scale, maxval=scale)
    return params


def _reference_forward(state, hidden, params, *, state_shape, hidden_shape, n_agents):
    """Pure-JAX reference mirroring the PyTorch module."""
    n_episode = state.shape[0]
    s = state.reshape(-1, state_shape)
    h = hidden.reshape(-1, hidden_shape * n_agents)

    def mlp(x, w1, b1, w2, b2):
        return jnp.maximum(x @ w1 + b1, 0.0) @ w2 + b2

    s2 = mlp(s, params["ws1"], params["bs1"], params["ws2"], params["bs2"])
    h2 = mlp(h, params["wh1"], params["bh1"], params["wh2"], params["bh2"])
    sh = jnp.concatenate([s2, h2], axis=1)
    v = mlp(sh, params["wv1"], params["bv1"], params["wv2"], params["bv2"])
    return v.reshape(n_episode, -1)


if __name__ == "__main__":
    # Small shapes consistent with the module's forward semantics.
    n_episode, T = 2, 8
    state_shape, hidden_shape, n_agents = 16, 32, 4

    key = jax.random.PRNGKey(0)
    k_state, k_hidden, k_params = jax.random.split(key, 3)

    state = jax.random.normal(k_state, (n_episode, T, state_shape), dtype=jnp.float32)
    hidden = jax.random.normal(
        k_hidden, (n_episode, T, n_agents, hidden_shape), dtype=jnp.float32)
    params = init_params(k_params, state_shape, hidden_shape, n_agents)

    fwd = functools.partial(
        qtran_vnet_forward,
        state_shape=state_shape, hidden_shape=hidden_shape, n_agents=n_agents)

    v_ref = _reference_forward(
        state, hidden, params,
        state_shape=state_shape, hidden_shape=hidden_shape, n_agents=n_agents)

    # 1) Default f32 path (B=16 -> tb=8, 2-step grid).
    v = fwd(state, hidden, params)
    jax.block_until_ready(v)
    assert v.shape == (n_episode, T), v.shape
    assert jnp.allclose(v, v_ref, atol=1e-4, rtol=1e-4), (
        float(jnp.max(jnp.abs(v - v_ref))))

    # 2) Multi-tile grid with a ragged last tile: B=400 with tb=128 -> 4 grid
    #    steps, last block has only 16 valid rows (masked partial write).
    T2 = 200
    state2 = jax.random.normal(k_state, (n_episode, T2, state_shape), dtype=jnp.float32)
    hidden2 = jax.random.normal(
        k_hidden, (n_episode, T2, n_agents, hidden_shape), dtype=jnp.float32)
    v2 = qtran_vnet_forward(
        state2, hidden2, params, state_shape=state_shape,
        hidden_shape=hidden_shape, n_agents=n_agents, block_batch=128)
    v2_ref = _reference_forward(
        state2, hidden2, params,
        state_shape=state_shape, hidden_shape=hidden_shape, n_agents=n_agents)
    jax.block_until_ready(v2)
    assert v2.shape == (n_episode, T2), v2.shape
    assert jnp.allclose(v2, v2_ref, atol=1e-4, rtol=1e-4), (
        float(jnp.max(jnp.abs(v2 - v2_ref))))

    # 3) bf16 activation path (HBM-bandwidth option for v5e/v6e when inputs
    #    already live in bf16); f32 accumulate, first-layer rounding only.
    v_bf16 = fwd(state, hidden, params, in_dtype=jnp.bfloat16)
    jax.block_until_ready(v_bf16)
    assert v_bf16.shape == (n_episode, T), v_bf16.shape
    assert jnp.allclose(v_bf16, v_ref, atol=1e-1, rtol=1e-1), (
        float(jnp.max(jnp.abs(v_bf16 - v_ref))))

    print("KERNEL_OK")
</pallas_src>

<mosaic_0001>
module attributes {stable_mosaic.version = 11 : i64} {
  func.func @_qtran_vnet_kernel(%arg0: i32, %arg1: memref<8x16xf32, #tpu.memory_space<vmem>>, %arg2: memref<8x128xf32, #tpu.memory_space<vmem>>, %arg3: memref<16x32xf32, #tpu.memory_space<vmem>>, %arg4: memref<1x32xf32, #tpu.memory_space<vmem>>, %arg5: memref<128x32xf32, #tpu.memory_space<vmem>>, %arg6: memref<1x32xf32, #tpu.memory_space<vmem>>, %arg7: memref<32x32xf32, #tpu.memory_space<vmem>>, %arg8: memref<32x32xf32, #tpu.memory_space<vmem>>, %arg9: memref<1x32xf32, #tpu.memory_space<vmem>>, %arg10: memref<1x32xf32, #tpu.memory_space<vmem>>, %arg11: memref<1x1xf32, #tpu.memory_space<vmem>>, %arg12: memref<8x1xf32, #tpu.memory_space<vmem>>) attributes {dimension_semantics = [#tpu.dimension_semantics<parallel>], iteration_bounds = array<i64: 2>, scalar_prefetch = 0 : i64, scratch_operands = 0 : i64, tpu.core_type = #tpu.core_type<tc>, window_params = [{transform_indices = @transform_0, window_bounds = array<i64: 8, 16>}, {transform_indices = @transform_1, window_bounds = array<i64: 8, 128>}, {pipeline_mode = #tpu.pipeline_mode<synchronous>, transform_indices = @transform_2, window_bounds = array<i64: 16, 32>}, {pipeline_mode = #tpu.pipeline_mode<synchronous>, transform_indices = @transform_3, window_bounds = array<i64: 1, 32>}, {pipeline_mode = #tpu.pipeline_mode<synchronous>, transform_indices = @transform_4, window_bounds = array<i64: 128, 32>}, {pipeline_mode = #tpu.pipeline_mode<synchronous>, transform_indices = @transform_5, window_bounds = array<i64: 1, 32>}, {pipeline_mode = #tpu.pipeline_mode<synchronous>, transform_indices = @transform_6, window_bounds = array<i64: 32, 32>}, {pipeline_mode = #tpu.pipeline_mode<synchronous>, transform_indices = @transform_7, window_bounds = array<i64: 32, 32>}, {pipeline_mode = #tpu.pipeline_mode<synchronous>, transform_indices = @transform_8, window_bounds = array<i64: 1, 32>}, {pipeline_mode = #tpu.pipeline_mode<synchronous>, transform_indices = @transform_9, window_bounds = array<i64: 1, 32>}, {pipeline_mode = #tpu.pipeline_mode<synchronous>, transform_indices = @transform_10, window_bounds = array<i64: 1, 1>}, {transform_indices = @transform_11, window_bounds = array<i64: 8, 1>}]} {
    %c0 = arith.constant 0 : index
    %c0_0 = arith.constant 0 : index
    %0 = vector.load %arg1[%c0, %c0_0] : memref<8x16xf32, #tpu.memory_space<vmem>>, vector<8x16xf32>
    %c0_1 = arith.constant 0 : index
    %c0_2 = arith.constant 0 : index
    %1 = vector.load %arg3[%c0_1, %c0_2] : memref<16x32xf32, #tpu.memory_space<vmem>>, vector<16x32xf32>
    %cst = arith.constant dense<0.000000e+00> : vector<8x32xf32>
    %2 = tpu.matmul %0, %1, %cst {dimension_numbers = #tpu.dot_dimension_numbers<[1], [0], [0], [1], [0, 0, 1, 1], [], []>} : vector<8x16xf32>, vector<16x32xf32>, vector<8x32xf32> -> vector<8x32xf32>
    %c0_3 = arith.constant 0 : index
    %c0_4 = arith.constant 0 : index
    %3 = vector.load %arg4[%c0_3, %c0_4] : memref<1x32xf32, #tpu.memory_space<vmem>>, vector<1x32xf32>
    %4 = vector.broadcast %3 : vector<1x32xf32> to vector<8x32xf32>
    %5 = arith.addf %2, %4 : vector<8x32xf32>
    %cst_5 = arith.constant 0.000000e+00 : f32
    %6 = vector.broadcast %cst_5 : f32 to vector<8x32xf32>
    %7 = arith.maximumf %5, %6 : vector<8x32xf32>
    %c0_6 = arith.constant 0 : index
    %c0_7 = arith.constant 0 : index
    %8 = vector.load %arg2[%c0_6, %c0_7] : memref<8x128xf32, #tpu.memory_space<vmem>>, vector<8x128xf32>
    %c0_8 = arith.constant 0 : index
    %c0_9 = arith.constant 0 : index
    %9 = vector.load %arg5[%c0_8, %c0_9] : memref<128x32xf32, #tpu.memory_space<vmem>>, vector<128x32xf32>
    %cst_10 = arith.constant dense<0.000000e+00> : vector<8x32xf32>
    %10 = tpu.matmul %8, %9, %cst_10 {dimension_numbers = #tpu.dot_dimension_numbers<[1], [0], [0], [1], [0, 0, 1, 1], [], []>} : vector<8x128xf32>, vector<128x32xf32>, vector<8x32xf32> -> vector<8x32xf32>
    %c0_11 = arith.constant 0 : index
    %c0_12 = arith.constant 0 : index
    %11 = vector.load %arg6[%c0_11, %c0_12] : memref<1x32xf32, #tpu.memory_space<vmem>>, vector<1x32xf32>
    %12 = vector.broadcast %11 : vector<1x32xf32> to vector<8x32xf32>
    %13 = arith.addf %10, %12 : vector<8x32xf32>
    %cst_13 = arith.constant 0.000000e+00 : f32
    %14 = vector.broadcast %cst_13 : f32 to vector<8x32xf32>
    %15 = arith.maximumf %13, %14 : vector<8x32xf32>
    %c0_14 = arith.constant 0 : index
    %c0_15 = arith.constant 0 : index
    %16 = vector.load %arg7[%c0_14, %c0_15] : memref<32x32xf32, #tpu.memory_space<vmem>>, vector<32x32xf32>
    %cst_16 = arith.constant dense<0.000000e+00> : vector<8x32xf32>
    %17 = tpu.matmul %7, %16, %cst_16 {dimension_numbers = #tpu.dot_dimension_numbers<[1], [0], [0], [1], [0, 0, 1, 1], [], []>} : vector<8x32xf32>, vector<32x32xf32>, vector<8x32xf32> -> vector<8x32xf32>
    %c0_17 = arith.constant 0 : index
    %c0_18 = arith.constant 0 : index
    %18 = vector.load %arg8[%c0_17, %c0_18] : memref<32x32xf32, #tpu.memory_space<vmem>>, vector<32x32xf32>
    %cst_19 = arith.constant dense<0.000000e+00> : vector<8x32xf32>
    %19 = tpu.matmul %15, %18, %cst_19 {dimension_numbers = #tpu.dot_dimension_numbers<[1], [0], [0], [1], [0, 0, 1, 1], [], []>} : vector<8x32xf32>, vector<32x32xf32>, vector<8x32xf32> -> vector<8x32xf32>
    %20 = arith.addf %17, %19 : vector<8x32xf32>
    %c0_20 = arith.constant 0 : index
    %c0_21 = arith.constant 0 : index
    %21 = vector.load %arg9[%c0_20, %c0_21] : memref<1x32xf32, #tpu.memory_space<vmem>>, vector<1x32xf32>
    %22 = vector.broadcast %21 : vector<1x32xf32> to vector<8x32xf32>
    %23 = arith.addf %20, %22 : vector<8x32xf32>
    %cst_22 = arith.constant 0.000000e+00 : f32
    %24 = vector.broadcast %cst_22 : f32 to vector<8x32xf32>
    %25 = arith.maximumf %23, %24 : vector<8x32xf32>
    %c0_23 = arith.constant 0 : index
    %c0_24 = arith.constant 0 : index
    %26 = vector.load %arg10[%c0_23, %c0_24] : memref<1x32xf32, #tpu.memory_space<vmem>>, vector<1x32xf32>
    %27 = vector.broadcast %26 : vector<1x32xf32> to vector<8x32xf32>
    %28 = arith.mulf %25, %27 : vector<8x32xf32>
    %cst_25 = arith.constant dense<0.000000e+00> : vector<8xf32>
    %29 = vector.multi_reduction <add>, %28, %cst_25 [1] : vector<8x32xf32> to vector<8xf32>
    %30 = vector.shape_cast %29 : vector<8xf32> to vector<8x1xf32>
    %c0_26 = arith.constant 0 : index
    %c0_27 = arith.constant 0 : index
    %31 = vector.load %arg11[%c0_26, %c0_27] : memref<1x1xf32, #tpu.memory_space<vmem>>, vector<1x1xf32>
    %32 = vector.broadcast %31 : vector<1x1xf32> to vector<8x1xf32>
    %33 = arith.addf %30, %32 : vector<8x1xf32>
    %c0_28 = arith.constant 0 : index
    %c0_29 = arith.constant 0 : index
    %34 = vector.load %arg12[%c0_28, %c0_29] : memref<8x1xf32, #tpu.memory_space<vmem>>, vector<8x1xf32>
    tpu.vector_store %arg12[%c0_28, %c0_29], %33 {strides = array<i32>} : memref<8x1xf32, #tpu.memory_space<vmem>>, vector<8x1xf32>,
    return
  }
  func.func @transform_0(%arg0: i32) -> (i32, i32) {
    %c0_i32 = arith.constant 0 : i32
    %c0_i32_0 = arith.constant 0 : i32
    return %arg0, %c0_i32 : i32, i32
  }
  func.func @transform_1(%arg0: i32) -> (i32, i32) {
    %c0_i32 = arith.constant 0 : i32
    %c0_i32_0 = arith.constant 0 : i32
    return %arg0, %c0_i32 : i32, i32
  }
  func.func @transform_2(%arg0: i32) -> (i32, i32) {
    %c0_i32 = arith.constant 0 : i32
    %c0_i32_0 = arith.constant 0 : i32
    %c0_i32_1 = arith.constant 0 : i32
    return %c0_i32, %c0_i32_0 : i32, i32
  }
  func.func @transform_3(%arg0: i32) -> (i32, i32) {
    %c0_i32 = arith.constant 0 : i32
    %c0_i32_0 = arith.constant 0 : i32
    %c0_i32_1 = arith.constant 0 : i32
    return %c0_i32, %c0_i32_0 : i32, i32
  }
  func.func @transform_4(%arg0: i32) -> (i32, i32) {
    %c0_i32 = arith.constant 0 : i32
    %c0_i32_0 = arith.constant 0 : i32
    %c0_i32_1 = arith.constant 0 : i32
    return %c0_i32, %c0_i32_0 : i32, i32
  }
  func.func @transform_5(%arg0: i32) -> (i32, i32) {
    %c0_i32 = arith.constant 0 : i32
    %c0_i32_0 = arith.constant 0 : i32
    %c0_i32_1 = arith.constant 0 : i32
    return %c0_i32, %c0_i32_0 : i32, i32
  }
  func.func @transform_6(%arg0: i32) -> (i32, i32) {
    %c0_i32 = arith.constant 0 : i32
    %c0_i32_0 = arith.constant 0 : i32
    %c0_i32_1 = arith.constant 0 : i32
    return %c0_i32, %c0_i32_0 : i32, i32
  }
  func.func @transform_7(%arg0: i32) -> (i32, i32) {
    %c0_i32 = arith.constant 0 : i32
    %c0_i32_0 = arith.constant 0 : i32
    %c0_i32_1 = arith.constant 0 : i32
    return %c0_i32, %c0_i32_0 : i32, i32
  }
  func.func @transform_8(%arg0: i32) -> (i32, i32) {
    %c0_i32 = arith.constant 0 : i32
    %c0_i32_0 = arith.constant 0 : i32
    %c0_i32_1 = arith.constant 0 : i32
    return %c0_i32, %c0_i32_0 : i32, i32
  }
  func.func @transform_9(%arg0: i32) -> (i32, i32) {
    %c0_i32 = arith.constant 0 : i32
    %c0_i32_0 = arith.constant 0 : i32
    %c0_i32_1 = arith.constant 0 : i32
    return %c0_i32, %c0_i32_0 : i32, i32
  }
  func.func @transform_10(%arg0: i32) -> (i32, i32) {
    %c0_i32 = arith.constant 0 : i32
    %c0_i32_0 = arith.constant 0 : i32
    %c0_i32_1 = arith.constant 0 : i32
    return %c0_i32, %c0_i32_0 : i32, i32
  }
  func.func @transform_11(%arg0: i32) -> (i32, i32) {
    %c0_i32 = arith.constant 0 : i32
    %c0_i32_0 = arith.constant 0 : i32
    return %arg0, %c0_i32 : i32, i32
  }
}

</mosaic_0001>

<bundles_post_ra>
// kernel: tpu_custom_call.1
= control target key start
LH: loop header
LB: loop body
LE: loop exit
PB: predicated region body
PF: predicated region fallthrough
CT: control target
= control target key end

     0   :  { %s1067_s19 = smov 0   ;;  %s1206_s0 = inlined_call_operand.vmem [shape: f32[16,16], index: 0, kind: input, shape index: {}]   ;;  %s1207_s1 = inlined_call_operand.vmem [shape: f32[16,128], index: 1, kind: input, shape index: {}]   ;;  %s1208_s2 = inlined_call_operand.vmem [shape: f32[16,32], index: 2, kind: input, shape index: {}]   ;;  %s1209_s3 = inlined_call_operand.vmem [shape: f32[1,32], index: 3, kind: input, shape index: {}]   ;;  %s1210_s4 = inlined_call_operand.vmem [shape: f32[128,32], index: 4, kind: input, shape index: {}]   ;;  %s1211_s5 = inlined_call_operand.vmem [shape: f32[1,32], index: 5, kind: input, shape index: {}]   ;;  %s1212_s6 = inlined_call_operand.vmem [shape: f32[32,32], index: 6, kind: input, shape index: {}]   ;;  %s1213_s7 = inlined_call_operand.vmem [shape: f32[32,32], index: 7, kind: input, shape index: {}]   ;;  %s1214_s8 = inlined_call_operand.vmem [shape: f32[1,32], index: 8, kind: input, shape index: {}]   ;;  %s1215_s9 = inlined_call_operand.vmem [shape: f32[1,32], index: 9, kind: input, shape index: {}]   ;;  %s1216_s10 = inlined_call_operand.<no memory space> [shape: f32[1,1], index: 10, kind: input, shape index: {}]   ;;  %s1217_s11 = inlined_call_operand.vmem [shape: f32[16,1], index: 11, kind: output, shape index: {}]  }
   0x1   :  { %v16_v0 = vstv %s1216_s10 }
   0x2   :  { %17 = vst [vmem:[#allocation2] sm:$0x1] %v16_v0 }
   0x3 LB: > { %s831_s20 = sadd.s32 4294967295, %s999_s19   ;;  %p835_p0 = scmp.ge.s32.totalorder %s999_s19, 1  ;;  %s999_s19 = sphi %s1067_s19, %s23_s19  }
   0x4   : > { %p347_p1 = scmp.lt.s32.totalorder %s999_s19, 3 }
   0x6   : > { %p348_p2 = pnand %p835_p0, %p347_p1 }
   0x7   : > { %v487_v1 = vld [vmem:[%s1210_s4] sm:$0xff] (!%p348_p2)  ;;  %v488_v2 = vld [vmem:[%s1210_s4 + $0x8] sm:$0xff] (!%p348_p2)  ;;  %v489_v3 = vld [vmem:[%s1210_s4 + $0x10] sm:$0xff] (!%p348_p2)  ;;  %v1001_v4 = vmov (!%p348_p2), 0.0|0.0   ;;  %vm1002_vm0 = vmmov (!%p348_p2), 0   ;;  %v1003_v7 = vmov (!%p348_p2), 0.0  }
   0x8   : > { %351 = sbr.rel (%p348_p2) target bundleno = 631 (0x277), region = 64  ;;  %946 = vmatprep.subr.bf16.mxu1 (!%p348_p2), %v1001_v4  ;;  %v947_v5 = vpack.c.bf16 (!%p348_p2), %v488_v2, %v487_v1  ;;  %v490_v6 = vld [vmem:[%s1210_s4 + $0x18] sm:$0xff] (!%p348_p2)  ;;  %918 = vmatprep.mubr.msk.f32.mxu1 (!%p348_p2), %vm1002_vm0, %v1003_v7  ;;  %p389_p3 = scmp.lt.s32.totalorder (!%p348_p2), %s831_s20, 1  ;;  %v491_v9 = vld [vmem:[%s1210_s4 + $0x20] sm:$0xff] (!%p348_p2)  ;;  %v492_v10 = vld [vmem:[%s1210_s4 + $0x28] sm:$0xff] (!%p348_p2)  ;;  %vm411_vm1 = vcmask (!%p348_p2), 130048  }
   0x9   : > { %943 = vmatprep.subr.bf16.mxu0 (!%p348_p2), %v1001_v4  ;;  %883 = vmatprep.mubr.msk.f32.mxu0 (!%p348_p2), %vm1002_vm0, %v1003_v7  ;;  %v950_v8 = vpack.c.bf16 (!%p348_p2), %v490_v6, %v489_v3  ;;  %v402_v11 = vld [vmem:[%s1208_s2] sm:$0xff] (!%p348_p2)  ;;  %v403_v12 = vld [vmem:[%s1208_s2 + $0x8] sm:$0xff] (!%p348_p2)  ;;  %v953_v16 = vpack.c.bf16 (!%p348_p2), %v492_v10, %v491_v9  ;;  %v493_v17 = vld [vmem:[%s1210_s4 + $0x30] sm:$0xff] (!%p348_p2)  ;;  %vm589_vm2 = vcmask (!%p348_p2), 261120   ;;  %vm764_vm3 = vcmask (!%p348_p2), 7168  }
   0xa   : > { %948 = vmatpush3.bf16.msra.mxu1 (!%p348_p2), %v947_v5  ;;  %v944_v13 = vpack.c.bf16 (!%p348_p2), %v403_v12, %v402_v11  ;;  %v585_v14 = vld [vmem:[%s1213_s7] sm:$0xff] (!%p348_p2)  ;;  %v586_v15 = vld [vmem:[%s1213_s7 + $0x8] sm:$0xff] (!%p348_p2)  ;;  %v494_v18 = vld [vmem:[%s1210_s4 + $0x38] sm:$0xff] (!%p348_p2) }
   0xb   : > { %949 = vmatprep.subr.bf16.mxu1 (!%p348_p2), %v1001_v4  ;;  %v971_v20 = vpack.c.bf16 (!%p348_p2), %v586_v15, %v585_v14  ;;  %v956_v21 = vpack.c.bf16 (!%p348_p2), %v494_v18, %v493_v17  ;;  %v495_v22 = vld [vmem:[%s1210_s4 + $0x40] sm:$0xff] (!%p348_p2)  ;;  %v496_v23 = vld [vmem:[%s1210_s4 + $0x48] sm:$0xff] (!%p348_p2)  ;;  %v497_v25 = vld [vmem:[%s1210_s4 + $0x50] sm:$0xff] (!%p348_p2) }
   0xc   : > { %945 = vmatpush3.bf16.msra.mxu0 (!%p348_p2), %v944_v13  ;;  %v959_v24 = vpack.c.bf16 (!%p348_p2), %v496_v23, %v495_v22  ;;  %v498_v26 = vld [vmem:[%s1210_s4 + $0x58] sm:$0xff] (!%p348_p2)  ;;  %v499_v28 = vld [vmem:[%s1210_s4 + $0x60] sm:$0xff] (!%p348_p2)  ;;  %v500_v29 = vld [vmem:[%s1210_s4 + $0x68] sm:$0xff] (!%p348_p2) }
   0xd   : > { %970 = vmatprep.subr.bf16.mxu0 (!%p348_p2), %v1001_v4  ;;  %v962_v27 = vpack.c.bf16 (!%p348_p2), %v498_v26, %v497_v25  ;;  %v965_v30 = vpack.c.bf16 (!%p348_p2), %v500_v29, %v499_v28  ;;  %v501_v31 = vld [vmem:[%s1210_s4 + $0x70] sm:$0xff] (!%p348_p2)  ;;  %v502_v32 = vld [vmem:[%s1210_s4 + $0x78] sm:$0xff] (!%p348_p2)  ;;  %v841_v40 = vld [vmem:[%s1211_s5] ss:$0 sm:$0xff] (!%p348_p2) }
   0xe   : > { %951 = vmatpush3.bf16.msra.mxu1 (!%p348_p2), %v950_v8  ;;  %v968_v33 = vpack.c.bf16 (!%p348_p2), %v502_v32, %v501_v31  ;;  %v587_v35 = vld [vmem:[%s1213_s7 + $0x10] sm:$0xff] (!%p348_p2)  ;;  %v588_v36 = vld [vmem:[%s1213_s7 + $0x18] sm:$0xff] (!%p348_p2)  ;;  %v581_v41 = vld [vmem:[%s1212_s6] sm:$0xff] (!%p348_p2) }
   0xf   : > { %s1219_s20 = smov (!%p389_p3, %s831_s20), 1  ;;  %952 = vmatprep.subr.bf16.mxu1 %v1001_v4  ;;  %v974_v37 = vpack.c.bf16 %v588_v36, %v587_v35  ;;  %v582_v42 = vld [vmem:[%s1212_s6 + $0x8] sm:$0xff]  ;;  %v839_v47 = vld [vmem:[%s1209_s3] ss:$0 sm:$0xff]  ;;  %v583_v49 = vld [vmem:[%s1212_s6 + $0x10] sm:$0xff] }
  0x10   : > { %s1106_s17 = sshll.u32 %s1219_s20, 3  ;;  %v977_v46 = vpack.c.bf16 %v582_v42, %v581_v41  ;;  %v584_v50 = vld [vmem:[%s1212_s6 + $0x18] sm:$0xff]  ;;  %v844_v57 = vld [vmem:[%s1214_s8] ss:$0 sm:$0xff] }
  0x11   : > { %s392_s25 = scalar_lea.vmem %s1206_s0, %s1106_s17  ;;  %s396_s29 = scalar_lea.vmem %s1207_s1, %s1106_s17  ;;  %v980_v52 = vpack.c.bf16 %v584_v50, %v583_v49  ;;  %v845_v61 = vld [vmem:[%s1215_s9] ss:$0 sm:$0xff] }
  0x12   : > { %v401_v19 = vld [vmem:[%s392_s25] sm:$0xff]  ;;  %954 = vmatpush3.bf16.msra.mxu1 %v953_v16  ;;  %s400_s15 = scalar_lea.vmem %s1217_s11, %s1106_s17 }
  0x13   : > { %884 = vmatmul.mubr.msk.f32.vlgmr.msra.gmra.mrb[0].mxu0 %vm411_vm1, %v401_v19  ;;  %955 = vmatprep.subr.bf16.mxu1 %v1001_v4  ;;  %v486_v34 = vld [vmem:[%s396_s29] sm:$0xff] }
  0x14   : > { %972 = vmatpush3.bf16.msra.mxu0 %v971_v20  ;;  %929 = vmatprep.mubr.msk.f32.mxu0 %vm1002_vm0, %v1003_v7  ;;  %v846_v1 = vld [vmem:[#allocation2] ss:$0 sm:$0xff] }
  0x15   : > { %973 = vmatprep.subr.bf16.mxu0 %v1001_v4 }
  0x16   : > { %957 = vmatpush3.bf16.msra.mxu1 %v956_v21 }
  0x17   : > { %958 = vmatprep.subr.bf16.mxu1 %v1001_v4 }
  0x18   : > { %975 = vmatpush3.bf16.msra.mxu0 %v974_v37 }
  0x19   : > { %976 = vmatprep.subr.bf16.mxu0 %v1001_v4 }
  0x1a   : > { %960 = vmatpush3.bf16.msra.mxu1 %v959_v24 }
  0x1b   : > { %961 = vmatprep.subr.bf16.mxu1 %v1001_v4 }
  0x1e   : > { %963 = vmatpush3.bf16.msra.mxu1 %v962_v27 }
  0x1f   : > { %964 = vmatprep.subr.bf16.mxu1 %v1001_v4 }
  0x22   : > { %966 = vmatpush3.bf16.msra.mxu1 %v965_v30 }
  0x23   : > { %967 = vmatprep.subr.bf16.mxu1 %v1001_v4 }
  0x26   : > { %969 = vmatpush3.bf16.msra.mxu1 %v968_v33 }
  0x29   : > { %919 = vmatmul.mubr.f32.vlgmr.msra.gmra.mrb[0].mxu1 %v486_v34 }
  0xe6   : > { %v481_v38 = vpop.f32.mrb[0].mxu0 }
  0xe7   : > { %v885_v39 = vpop.f32.mrb[1].mxu0  ;;  %v482_v51 = vadd.f32 %v839_v47, %v481_v38 }
  0xe9   : > { %v485_v53 = vmax.f32 %v482_v51, 0.0 }
  0xfc   : > { %v576_v43 = vpop.f32.mrb[0].mxu1 }
  0xfd   : > { %v577_v44 = vadd.f32 %v841_v40, %v576_v43  ;;  %v920_v45 = vpop.f32.mrb[1].mxu1 }
  0xff   : > { %v580_v48 = vmax.f32 %v577_v44, 0.0 }
 0x101   : > { %930 = vmatmul.mubr.msk.f32.vlgmr.msra.gmra.mrb[2].mxu0 %vm589_vm2, %v580_v48 }
 0x102   : > { %978 = vmatpush3.bf16.msra.mxu0 %v977_v46  ;;  %940 = vmatprep.mubr.msk.f32.mxu0 %vm1002_vm0, %v1003_v7 }
 0x103   : > { %979 = vmatprep.subr.bf16.mxu0 %v1001_v4 }
 0x106   : > { %981 = vmatpush3.bf16.msra.mxu0 %v980_v52 }
 0x109   : > { %941 = vmatmul.mubr.msk.f32.vlgmr.msra.gmra.mrb[4].mxu0 %vm589_vm2, %v485_v53 }
 0x1d4   : > { %v659_v54 = vpop.f32.mrb[2].mxu0 }
 0x1d5   : > { %v931_v55 = vpop.f32.mrb[3].mxu0 }
 0x1dc   : > { %v732_v56 = vpop.f32.mrb[4].mxu0 }
 0x1dd   : > { %v733_v58 = vadd.f32 %v732_v56, %v659_v54  ;;  %v942_v59 = vpop.f32.mrb[5].mxu0 }
 0x1df   : > { %v743_v60 = vadd.f32 %v844_v57, %v733_v58 }
 0x1e1   : > { %v744_v62 = vmax.f32 %v743_v60, 0.0 }
 0x1e3   : > { %v752_v63 = vmul.f32 %v845_v61, %v744_v62 }
 0x1e5   : > { %v753_v0 = vsel %vm589_vm2, %v752_v63, 0.0 }
 0x1e6   : > { %754 = vadd.xlane.f32.xlu0 %v753_v0 }
 0x273   : > { %v755_v2 = vpop.xlane.xlu0 %754 }
 0x274   : > { %v763_v3 = vadd.f32 %v846_v1, %v755_v2 }
 0x276   : > { %765 = vst.msk [vmem:[%s400_s15] sm:$0xff] %vm764_vm3, %v763_v3 }
 0x277 PF: > { %s23_s19 = sadd.s32 1, %s999_s19  }
 0x278   : > { %p20_p4 = scmp.ge.s32.totalorder %s23_s19, 4  }
 0x27a   :  { %22 = sbr.rel (!%p20_p4) target bundleno = 3 (0x3), region = 97 }

</bundles_post_ra>
